<compile_context>
chip_gen: v6e
topology: v6e:2x2x1
jax: 0.10.0
libtpu: 0.0.40
codegen_flags: <defaults>
</compile_context>

<pallas_src>
import jax
import jax.numpy as jnp
from jax.experimental import pallas as pl
from jax.experimental.pallas import tpu as pltpu


def _haar_inv_kernel(x_ref, even_ref, odd_ref, y_ref):
    # x_ref:    (1, 4, TH, W)  -- 4 input channels, TH input rows
    # even_ref: (W, 2W)        -- E[j, 2j]   = 1, else 0
    # odd_ref:  (W, 2W)        -- O[j, 2j+1] = 1, else 0
    # y_ref:    (1, TH, 4W)    -- y[0, i, ki*2W + 2j + kj] = out[2i+ki, 2j+kj]
    x0 = x_ref[0, 0].astype(jnp.float32)   # (TH, W)
    x1 = x_ref[0, 1].astype(jnp.float32)
    x2 = x_ref[0, 2].astype(jnp.float32)
    x3 = x_ref[0, 3].astype(jnp.float32)

    # Channel mixing on the VPU (Haar butterfly, weights are +-1): 8 adds/subs.
    s01 = x0 + x1
    d01 = x0 - x1
    s23 = x2 + x3
    d23 = x2 - x3
    a = s01 + s23   # (ki, kj) = (0, 0)
    b = d01 + d23   # (0, 1)
    c = s01 - s23   # (1, 0)
    d = d01 - d23   # (1, 1)

    e = even_ref[...]
    o = odd_ref[...]
    # Lane interleave via constant 0/1 spread matmuls (exact: selects * 1.0).
    row0 = (jnp.dot(a, e, preferred_element_type=jnp.float32)
            + jnp.dot(b, o, preferred_element_type=jnp.float32))   # (TH, 2W), ki=0
    row1 = (jnp.dot(c, e, preferred_element_type=jnp.float32)
            + jnp.dot(d, o, preferred_element_type=jnp.float32))   # (TH, 2W), ki=1

    y_ref[0] = jnp.concatenate([row0, row1], axis=-1).astype(y_ref.dtype)


def make_haar_weights():
    """Deterministic weights exactly as in HaarConv_inv.__init__ (shape (4,1,2,2))."""
    w = jnp.ones((4, 1, 2, 2), dtype=jnp.float32)
    w = w.at[1, :, 0, 1].set(-1.0)
    w = w.at[1, :, 1, 1].set(-1.0)
    w = w.at[2, :, 1, 0].set(-1.0)
    w = w.at[2, :, 1, 1].set(-1.0)
    w = w.at[3, :, 1, 0].set(-1.0)
    w = w.at[3, :, 0, 1].set(-1.0)
    return w


def _choose_row_tile(H, W, bytes_per_elem=4, target_bytes=1 << 20):
    """Rows per tile: a multiple of 8 dividing H (or H itself), sized so the
    4-channel input tile is ~target_bytes (>=512 KiB keeps the HBM DMA near
    roofline; small enough to double-buffer inside v7x's 64 MiB VMEM)."""
    if H % 8 != 0:
        return H                                    # full-extent block (always legal)
    rows_for_target = max(8, target_bytes // (4 * W * bytes_per_elem))
    th = max(8, min(H, (rows_for_target // 8) * 8))
    while H % th != 0:
        th -= 8
    return th


def haar_conv_inv(x, *, tile_rows=None):
    """x: (N, 4, H, W) NCHW -> out: (N, 1, 2H, 2W) NCHW (== conv_transpose2d, stride=2)."""
    N, C, H, W = x.shape
    assert C == 4, "HaarConv_inv expects 4 input channels"

    TH = _choose_row_tile(H, W) if tile_rows is None else tile_rows
    if H % TH != 0 or not (TH == H or TH % 8 == 0):
        TH = H                                      # safe fallback: full-extent rows
    T = H // TH

    # Constant 0/1 spread matrices for the kj lane interleave.
    col = jnp.arange(2 * W)[None, :]
    row = jnp.arange(W)[:, None]
    E = (col == 2 * row).astype(jnp.float32)        # (W, 2W)
    O = (col == 2 * row + 1).astype(jnp.float32)    # (W, 2W)

    in_tile_bytes = 4 * TH * W * 4
    out_tile_bytes = TH * 4 * W * 4
    const_bytes = 2 * (W * 2 * W * 4)
    vmem_limit = int(min(100 * (1 << 20),
                         max(16 * (1 << 20),
                             3 * (in_tile_bytes + out_tile_bytes)
                             + 2 * const_bytes + (4 << 20))))

    y = pl.pallas_call(
        _haar_inv_kernel,
        out_shape=jax.ShapeDtypeStruct((N, H, 4 * W), x.dtype),
        grid_spec=pltpu.PrefetchScalarGridSpec(
            num_scalar_prefetch=0,
            grid=(N, T),
            in_specs=[
                pl.BlockSpec((1, 4, TH, W), lambda n, t: (n, 0, t, 0)),
                pl.BlockSpec((W, 2 * W), lambda n, t: (0, 0)),
                pl.BlockSpec((W, 2 * W), lambda n, t: (0, 0)),
            ],
            out_specs=pl.BlockSpec((1, TH, 4 * W), lambda n, t: (n, t, 0)),
        ),
        compiler_params=pltpu.CompilerParams(
            dimension_semantics=("parallel", "parallel"),
            vmem_limit_bytes=vmem_limit,
        ),
    )(x, E, O)

    # (N, H, 4W) is row-major identical to (N, 1, 2H, 2W): free reshape, no transpose.
    return y.reshape(N, 1, 2 * H, 2 * W)


def _reference(x, haar_weights):
    """Pure-JAX reference of F.conv_transpose2d(x, w, stride=2) for this shape."""
    N, C, H, W = x.shape
    r = jnp.einsum('nchw,ckl->nhkwl', x, haar_weights[:, 0])
    return r.reshape(N, 1, 2 * H, 2 * W)


if __name__ == "__main__":
    key = jax.random.PRNGKey(0)
    N, C, H, W = 2, 4, 16, 16
    x = jax.random.normal(key, (N, C, H, W), dtype=jnp.float32)

    ref = _reference(x, make_haar_weights())

    # Auto tiling (whole 16x16 image per grid step for this tiny shape).
    out = jax.block_until_ready(haar_conv_inv(x))
    assert out.shape == (N, 1, 2 * H, 2 * W), out.shape
    assert jnp.allclose(out, ref, atol=1e-5, rtol=1e-5), "mismatch vs reference (auto tile)"

    # Explicit row tiling -> grid (N, 2): exercises the pipelined multi-tile path.
    out_tiled = jax.block_until_ready(haar_conv_inv(x, tile_rows=8))
    assert jnp.allclose(out_tiled, ref, atol=1e-5, rtol=1e-5), "mismatch vs reference (tiled)"

    print("KERNEL_OK")
</pallas_src>

<mosaic_0001>
module attributes {stable_mosaic.version = 11 : i64} {
  func.func @_haar_inv_kernel(%arg0: i32, %arg1: i32, %arg2: memref<1x4x16x16xf32, #tpu.memory_space<vmem>>, %arg3: memref<16x32xf32, #tpu.memory_space<vmem>>, %arg4: memref<16x32xf32, #tpu.memory_space<vmem>>, %arg5: memref<1x16x64xf32, #tpu.memory_space<vmem>>) attributes {dimension_semantics = [#tpu.dimension_semantics<parallel>, #tpu.dimension_semantics<parallel>], iteration_bounds = array<i64: 2, 1>, scalar_prefetch = 0 : i64, scratch_operands = 0 : i64, tpu.core_type = #tpu.core_type<tc>, window_params = [{transform_indices = @transform_0, window_bounds = array<i64: 1, 4, 16, 16>}, {pipeline_mode = #tpu.pipeline_mode<synchronous>, transform_indices = @transform_1, window_bounds = array<i64: 16, 32>}, {pipeline_mode = #tpu.pipeline_mode<synchronous>, transform_indices = @transform_2, window_bounds = array<i64: 16, 32>}, {transform_indices = @transform_3, window_bounds = array<i64: 1, 16, 64>}]} {
    %c0 = arith.constant 0 : index
    %c0_0 = arith.constant 0 : index
    %c0_1 = arith.constant 0 : index
    %c0_2 = arith.constant 0 : index
    %0 = vector.load %arg2[%c0, %c0_0, %c0_1, %c0_2] : memref<1x4x16x16xf32, #tpu.memory_space<vmem>>, vector<1x1x16x16xf32>
    %1 = vector.shape_cast %0 : vector<1x1x16x16xf32> to vector<16x16xf32>
    %c0_3 = arith.constant 0 : index
    %c1 = arith.constant 1 : index
    %c0_4 = arith.constant 0 : index
    %c0_5 = arith.constant 0 : index
    %2 = vector.load %arg2[%c0_3, %c1, %c0_4, %c0_5] : memref<1x4x16x16xf32, #tpu.memory_space<vmem>>, vector<1x1x16x16xf32>
    %3 = vector.shape_cast %2 : vector<1x1x16x16xf32> to vector<16x16xf32>
    %c0_6 = arith.constant 0 : index
    %c2 = arith.constant 2 : index
    %c0_7 = arith.constant 0 : index
    %c0_8 = arith.constant 0 : index
    %4 = vector.load %arg2[%c0_6, %c2, %c0_7, %c0_8] : memref<1x4x16x16xf32, #tpu.memory_space<vmem>>, vector<1x1x16x16xf32>
    %5 = vector.shape_cast %4 : vector<1x1x16x16xf32> to vector<16x16xf32>
    %c0_9 = arith.constant 0 : index
    %c3 = arith.constant 3 : index
    %c0_10 = arith.constant 0 : index
    %c0_11 = arith.constant 0 : index
    %6 = vector.load %arg2[%c0_9, %c3, %c0_10, %c0_11] : memref<1x4x16x16xf32, #tpu.memory_space<vmem>>, vector<1x1x16x16xf32>
    %7 = vector.shape_cast %6 : vector<1x1x16x16xf32> to vector<16x16xf32>
    %8 = arith.addf %1, %3 : vector<16x16xf32>
    %9 = arith.subf %1, %3 : vector<16x16xf32>
    %10 = arith.addf %5, %7 : vector<16x16xf32>
    %11 = arith.subf %5, %7 : vector<16x16xf32>
    %12 = arith.addf %8, %10 : vector<16x16xf32>
    %13 = arith.addf %9, %11 : vector<16x16xf32>
    %14 = arith.subf %8, %10 : vector<16x16xf32>
    %15 = arith.subf %9, %11 : vector<16x16xf32>
    %c0_12 = arith.constant 0 : index
    %c0_13 = arith.constant 0 : index
    %16 = vector.load %arg3[%c0_12, %c0_13] : memref<16x32xf32, #tpu.memory_space<vmem>>, vector<16x32xf32>
    %c0_14 = arith.constant 0 : index
    %c0_15 = arith.constant 0 : index
    %17 = vector.load %arg4[%c0_14, %c0_15] : memref<16x32xf32, #tpu.memory_space<vmem>>, vector<16x32xf32>
    %cst = arith.constant dense<0.000000e+00> : vector<16x32xf32>
    %18 = tpu.matmul %12, %16, %cst {dimension_numbers = #tpu.dot_dimension_numbers<[1], [0], [0], [1], [0, 0, 1, 1], [], []>} : vector<16x16xf32>, vector<16x32xf32>, vector<16x32xf32> -> vector<16x32xf32>
    %cst_16 = arith.constant dense<0.000000e+00> : vector<16x32xf32>
    %19 = tpu.matmul %13, %17, %cst_16 {dimension_numbers = #tpu.dot_dimension_numbers<[1], [0], [0], [1], [0, 0, 1, 1], [], []>} : vector<16x16xf32>, vector<16x32xf32>, vector<16x32xf32> -> vector<16x32xf32>
    %20 = arith.addf %18, %19 : vector<16x32xf32>
    %cst_17 = arith.constant dense<0.000000e+00> : vector<16x32xf32>
    %21 = tpu.matmul %14, %16, %cst_17 {dimension_numbers = #tpu.dot_dimension_numbers<[1], [0], [0], [1], [0, 0, 1, 1], [], []>} : vector<16x16xf32>, vector<16x32xf32>, vector<16x32xf32> -> vector<16x32xf32>
    %cst_18 = arith.constant dense<0.000000e+00> : vector<16x32xf32>
    %22 = tpu.matmul %15, %17, %cst_18 {dimension_numbers = #tpu.dot_dimension_numbers<[1], [0], [0], [1], [0, 0, 1, 1], [], []>} : vector<16x16xf32>, vector<16x32xf32>, vector<16x32xf32> -> vector<16x32xf32>
    %23 = arith.addf %21, %22 : vector<16x32xf32>
    %24 = tpu.concatenate %20, %23 in 1 : vector<16x32xf32>, vector<16x32xf32> -> vector<16x64xf32>
    %c0_19 = arith.constant 0 : index
    %c0_20 = arith.constant 0 : index
    %c0_21 = arith.constant 0 : index
    %25 = vector.load %arg5[%c0_19, %c0_20, %c0_21] : memref<1x16x64xf32, #tpu.memory_space<vmem>>, vector<1x16x64xf32>
    %26 = vector.shape_cast %25 : vector<1x16x64xf32> to vector<16x64xf32>
    %27 = vector.shape_cast %24 : vector<16x64xf32> to vector<1x16x64xf32>
    tpu.vector_store %arg5[%c0_19, %c0_20, %c0_21], %27 {strides = array<i32>} : memref<1x16x64xf32, #tpu.memory_space<vmem>>, vector<1x16x64xf32>,
    return
  }
  func.func @transform_0(%arg0: i32, %arg1: i32) -> (i32, i32, i32, i32) {
    %c0_i32 = arith.constant 0 : i32
    %c0_i32_0 = arith.constant 0 : i32
    %c0_i32_1 = arith.constant 0 : i32
    return %arg0, %c0_i32, %arg1, %c0_i32_0 : i32, i32, i32, i32
  }
  func.func @transform_1(%arg0: i32, %arg1: i32) -> (i32, i32) {
    %c0_i32 = arith.constant 0 : i32
    %c0_i32_0 = arith.constant 0 : i32
    %c0_i32_1 = arith.constant 0 : i32
    return %c0_i32, %c0_i32_0 : i32, i32
  }
  func.func @transform_2(%arg0: i32, %arg1: i32) -> (i32, i32) {
    %c0_i32 = arith.constant 0 : i32
    %c0_i32_0 = arith.constant 0 : i32
    %c0_i32_1 = arith.constant 0 : i32
    return %c0_i32, %c0_i32_0 : i32, i32
  }
  func.func @transform_3(%arg0: i32, %arg1: i32) -> (i32, i32, i32) {
    %c0_i32 = arith.constant 0 : i32
    %c0_i32_0 = arith.constant 0 : i32
    return %arg0, %arg1, %c0_i32 : i32, i32, i32
  }
}

</mosaic_0001>

<bundles_post_ra>
// kernel: tpu_custom_call.1
= control target key start
LH: loop header
LB: loop body
LE: loop exit
PB: predicated region body
PF: predicated region fallthrough
CT: control target
= control target key end

     0   :  { %8 = vsyncpa [#allocation3], 0  ;;  %s1298_s0 = inlined_call_operand.hbm [shape: f32[2,4,16,16], index: 0, kind: input, shape index: {}]   ;;  %s1299_s1 = inlined_call_operand.hbm [shape: f32[16,32], index: 1, kind: input, shape index: {}]   ;;  %s1300_s2 = inlined_call_operand.hbm [shape: f32[16,32], index: 2, kind: input, shape index: {}]   ;;  %s1301_s3 = inlined_call_operand.hbm [shape: f32[2,16,64], index: 3, kind: output, shape index: {}]  }
   0x1   :  { %10 = vsyncpa [#allocation3 + $0x1], 0 }
   0x2   :  { %11 = vsyncpa [#allocation6], 0 }
   0x3   :  { %12 = vsyncpa [#allocation4], 0 }
   0x4   :  { %14 = vsyncpa [#allocation4 + $0x1], 0  ;;  %s1092_s12 = smov 0   ;;  %s1094_s13 = smov 0  }
   0x5   :  { %s1096_s14 = smov 0   ;;  %s1098_s15 = smov 0  }
   0x6   :  { %s1100_s16 = smov 0   ;;  %s1102_s17 = smov 0  }
   0x7 LB: > { %s730_s18 = sadd.s32 4294967295, %s1061_s17   ;;  %s731_s19 = sadd.s32 4294967294, %s1061_s17   ;;  %s1061_s17 = sphi %s1102_s17, %s20_s17   ;;  %s1057_s16 = sphi %s1100_s16, %s1318_s16   ;;  %s1053_s15 = sphi %s1098_s15, %s1317_s15   ;;  %s1049_s14 = sphi %s1096_s14, %s1316_s14   ;;  %s1045_s13 = sphi %s1094_s13, %s1315_s13   ;;  %s1041_s12 = sphi %s1092_s12, %s1314_s12  }
   0x8   : > { %p54_p0 = scmp.ne.s32.totalorder %s1045_s13, %s1041_s12  ;;  %p1126_p1 = scmp.eq.s32.totalorder %s730_s18, 0 }
   0x9   : > { %p1130_p2 = scmp.eq.s32.totalorder %s730_s18, 1  ;;  %p128_p3 = scmp.eq.s32.totalorder %s731_s19, 1 }
   0xa   : > { %p1136_p4 = por %p1126_p1, %p54_p0  ;;  %p732_p5 = scmp.ge.s32.totalorder %s1061_s17, 1 }
   0xb   : > { %p1141_p6 = por %p128_p3, %p54_p0  ;;  %p135_p7 = scmp.lt.s32.totalorder %s1061_s17, 3 }
   0xc   : > { %s1063_s25 = smov [#allocation5]   ;;  %s1064_s28 = smov [#allocation7]  }
   0xd   : > { %s1306_s23 = scalar_select %p1141_p6, 1, 0 }
   0xe   : > { %p1146_p8 = pnand %p732_p5, %p135_p7  ;;  %s147_s26 = sshll.u32 %s1063_s25, 4  ;;  %s148_s26 = int_to_ptr.vmem [resolvable:$true] %s147_s26 }
   0xf   : > { %s160_s29 = sshll.u32 %s1064_s28, 4  ;;  %s908_s30 = scalar_lea.vmem %s148_s26, 256  ;;  %s161_s29 = int_to_ptr.vmem [resolvable:$true] %s160_s29 }
  0x10   : > { %p821_p9 = pneg %p1146_p8  ;;  %p909_p13 = scmp.ne.s32.totalorder %s148_s26, %s908_s30 }
  0x11   : > { %p916_p5 = scmp.lt.s32.totalorder %s148_s26, %s148_s26  ;;  %p917_p7 = scmp.lt.s32.totalorder %s908_s30, %s908_s30 }
  0x12   : > { %p1155_p11 = pnand %p821_p9, %p1126_p1 }
  0x13   : > { %p918_p10 = por %p917_p7, %p916_p5 }
  0x14   : > { %p899_p12 = pneg %p1155_p11 }
  0x16   : > { %p911_p0 = pnand %p909_p13, %p899_p12 }
  0x18   : > { %p912_p3 = pneg %p911_p0 }
  0x1a   : > { %p919_p9 = pnand %p918_p10, %p912_p3 }
  0x1c   : > { %922 = shalt.err (!%p919_p9)
}
  0x1d   : > { %s1302_s4 = smov 128   ;;  %s1066_s5 = smov 8  }
  0x1e   : > { %824 = dma.hbm_to_vmem [thread:$0]  (!%p1155_p11), %s1299_s1, 256, %s148_s26, [#allocation6], %s1302_s4, %s1302_s4, %s1066_s5  }
  0x1f   : > { %s934_s8 = scalar_lea.vmem %s161_s29, 256  ;;  %p942_p10 = scmp.lt.s32.totalorder %s161_s29, %s161_s29 }
  0x20   : > { %p935_p13 = scmp.ne.s32.totalorder %s161_s29, %s934_s8  ;;  %p943_p3 = scmp.lt.s32.totalorder %s934_s8, %s934_s8 }
  0x22   : > { %p937_p0 = pnand %p935_p13, %p899_p12  ;;  %p944_p7 = por %p943_p3, %p942_p10 }
  0x24   : > { %p938_p5 = pneg %p937_p0 }
  0x26   : > { %p945_p9 = pnand %p944_p7, %p938_p5 }
  0x28   : > { %948 = shalt.err (!%p945_p9)
}
  0x29   : > { %827 = dma.hbm_to_vmem [thread:$0]  (!%p1155_p11), %s1300_s2, 256, %s161_s29, [#allocation6], %s1302_s4, %s1302_s4, %s1066_s5  }
  0x2a   : > { %s32_s11 = sadd.s32 1, %s1057_s16  ;;  %s41_s18 = sadd.s32 1, %s1049_s14 }
  0x2b   : > { %p34_p12 = scmp.ge.s32.totalorder %s32_s11, 2  ;;  %p48_p13 = scmp.ne.s32.totalorder %s1049_s14, %s1045_s13 }
  0x2c   : > { %p49_p0 = scmp.eq.s32.totalorder %s1061_s17, 0  ;;  %p838_p5 = scmp.lt.s32.totalorder %s1061_s17, 2 }
  0x2d   : > { %s1320_s11 = smov (%p34_p12, %s32_s11), 0  ;;  %p1193_p3 = por %p1130_p2, %p48_p13 }
  0x2e   : > { %p50_p10 = por %p49_p0, %p48_p13  ;;  %s36_s25 = ssub.s32 %s1057_s16, %s1320_s11 }
  0x2f   : > { %s174_s26 = sand.u32 1, %s1049_s14   ;;  %p39_p7 = scmp.eq.s32.totalorder %s36_s25, 0 }
  0x30   : > { %s736_s27 = sshll.u32 %s174_s26, 6  ;;  %s763_s28 = sshll.u32 %s1057_s16, 10 }
  0x31   : > { %s1202_s29 = scalar_select %p39_p7, %s1049_s14, %s41_s18  }
  0x32   : > { %s186_s7 = scalar_lea.hbm %s1298_s0, %s763_s28  ;;  %s178_s8 = scalar_lea.vmem [#allocation2], %s736_s27 }
  0x33   : > { %s187_s9 = sshll.u32 %s178_s8, 4  ;;  %p1209_p11 = pnand %p838_p5, %p50_p10  ;;  %s188_s9 = int_to_ptr.vmem [resolvable:$true] %s187_s9 }
  0x34   : > { %s175_s10 = scalar_lea.sflag [#allocation3], %s174_s26  ;;  %s962_s25 = scalar_lea.vmem %s188_s9, 1024 }
  0x35   : > { %p951_p2 = pneg %p1209_p11  ;;  %p963_p9 = scmp.ne.s32.totalorder %s188_s9, %s962_s25 }
  0x36   : > { %s1067_s18 = smov [#allocation2]  }
  0x37   : > { %p965_p12 = pnand %p963_p9, %p951_p2  ;;  %s967_s4 = sshll.u32 %s1067_s18, 4  ;;  %s968_s4 = int_to_ptr.vmem [resolvable:$false] %s967_s4 }
  0x38   : > { %s969_s28 = scalar_lea.vmem %s968_s4, 2048  ;;  %p970_p0 = scmp.lt.s32.totalorder %s188_s9, %s968_s4 }
  0x39   : > { %p966_p13 = pneg %p965_p12  ;;  %p971_p7 = scmp.lt.s32.totalorder %s969_s28, %s962_s25 }
  0x3b   : > { %p972_p6 = por %p971_p7, %p970_p0 }
  0x3d   : > { %p973_p5 = pnand %p972_p6, %p966_p13 }
  0x3f   : > { %976 = shalt.err (!%p973_p5)
}
  0x40   : > { %s1311_s27 = smov 128   ;;  %199 = sbr.rel (%p1146_p8) target bundleno = 417 (0x1a1), region = 32 }
  0x41   : > { %831 = dma.hbm_to_vmem [thread:$0]  (!%p1209_p11), %s186_s7, 1024, %s188_s9, %s175_s10, %s1311_s27, %s1311_s27, %s1066_s5  }
  0x42   : > { %s1223_s26 = sand.u32 (!%p1146_p8), 1, %s1045_s13  }
  0x43   : > { %s740_s4 = sshll.u32 (!%p1146_p8), %s1223_s26, 6  ;;  %s202_s30 = scalar_lea.sflag (!%p1146_p8), [#allocation3], %s1223_s26 }
  0x44   : > { %s205_s6 = scalar_lea.vmem (!%p1146_p8), [#allocation2], %s740_s4 }
  0x45   : > { %1028 = dma.done.wait (%p1136_p4), %s202_s30, 1024  }
  0x46   : > { %1030 = vsyncadd (%p1136_p4), %s202_s30, 4294966272 }
  0x47   : > { %1032 = dma.done.wait (%p1126_p1), [#allocation6], 512  }
  0x48   : > { %1034 = vsyncadd (%p1126_p1), [#allocation6], 4294966784  ;;  %v268_v0 = vld [vmem:[#allocation7 + $0x8] sm:$0xff]  ;;  %v266_v1 = vld [vmem:[#allocation5 + $0x8] sm:$0xff]  ;;  %vm269_vm0 = vcmask 130048   ;;  %s1068_s20 = smov 32  }
  0x49   : > { %v267_v2 = vld [vmem:[#allocation7] sm:$0xff]  ;;  %781 = vmatprep.subr.mxu0 %v268_v0  ;;  %788 = vmatprep.subr.mxu1 %v266_v1  ;;  %v265_v3 = vld [vmem:[#allocation5] sm:$0xff]  ;;  %v239_v10 = vld [vmem:[%s205_s6 + $0x8] sm:$0xff]  ;;  %s743_s22 = sshll.u32 %s1223_s26, 4  ;;  %vm602_vm1 = vcmask 261120   ;;  %vm605_vm2 = vcmask 523264  }
  0x4a   : > { %v238_v4 = vld [vmem:[%s205_s6] sm:$0xff]  ;;  %v744_v5 = vld [vmem:[%s205_s6 + $0x10] sm:$0xff]  ;;  %782 = vmatpush3.msra.mxu0 %v268_v0  ;;  %789 = vmatpush3.msra.mxu1 %v266_v1  ;;  %v745_v13 = vld [vmem:[%s205_s6 + $0x18] sm:$0xff]  ;;  %s235_s24 = scalar_lea.vmem [#allocation8], %s743_s22  ;;  %s764_s7 = sshll.u32 %s1053_s15, 8 }
  0x4b   : > { %v746_v6 = vld [vmem:[%s205_s6 + $0x20] sm:$0xff]  ;;  %v748_v7 = vld [vmem:[%s205_s6 + $0x30] sm:$0xff]  ;;  %v251_v8 = vsub.f32 %v238_v4, %v744_v5  ;;  %v249_v9 = vadd.f32 %v744_v5, %v238_v4  ;;  %783 = vmatprep.subr.mxu0 %v267_v2  ;;  %790 = vmatprep.subr.mxu1 %v265_v3  ;;  %v747_v14 = vld [vmem:[%s205_s6 + $0x28] sm:$0xff]  ;;  %v252_v16 = vsub.f32 %v239_v10, %v745_v13  ;;  %s624_s5 = sshll.u32 %s235_s24, 4  ;;  %s1250_s21 = scalar_lea.hbm %s1301_s3, %s764_s7  ;;  %s1245_s5 = int_to_ptr.vmem [resolvable:$true] %s624_s5 }
  0x4c   : > { %v255_v11 = vsub.f32 %v746_v6, %v748_v7  ;;  %v253_v12 = vadd.f32 %v748_v7, %v746_v6  ;;  %v749_v15 = vld [vmem:[%s205_s6 + $0x38] sm:$0xff]  ;;  %784 = vmatpush3.msra.mxu0 %v267_v2  ;;  %791 = vmatpush3.msra.mxu1 %v265_v3  ;;  %v250_v18 = vadd.f32 %v745_v13, %v239_v10  ;;  %s609_s10 = scalar_lea.sflag [#allocation4], %s1223_s26  ;;  %s977_s25 = scalar_lea.vmem %s1245_s5, 256 }
  0x4d   : > { %v256_v17 = vsub.f32 %v747_v14, %v749_v15  ;;  %795 = vmatprep.subr.mxu0 %v268_v0  ;;  %802 = vmatprep.subr.mxu1 %v266_v1  ;;  %v254_v23 = vadd.f32 %v749_v15, %v747_v14  ;;  %p978_p1 = scmp.ne.s32.totalorder %s1245_s5, %s977_s25  ;;  %s1069_s15 = smov [#allocation8]  }
  0x4e   : > { %v259_v19 = vadd.f32 %v255_v11, %v251_v8  ;;  %v263_v20 = vsub.f32 %v251_v8, %v255_v11  ;;  %v257_v21 = vadd.f32 %v253_v12, %v249_v9  ;;  %v261_v24 = vsub.f32 %v249_v9, %v253_v12  ;;  %s981_s18 = sshll.u32 %s1069_s15, 4  ;;  %s982_s18 = int_to_ptr.vmem [resolvable:$false] %s981_s18 }
  0x4f   : > { %v260_v22 = vadd.f32 %v256_v17, %v252_v16  ;;  %v258_v25 = vadd.f32 %v254_v23, %v250_v18  ;;  %v264_v26 = vsub.f32 %v252_v16, %v256_v17  ;;  %v262_v27 = vsub.f32 %v250_v18, %v254_v23  ;;  %p979_p4 = pnand %p978_p1, %p1193_p3  ;;  %s983_s28 = scalar_lea.vmem %s982_s18, 512 }
  0x50   : > { %785 = vmatprep.mubr.msk.f32.mxu0 %vm269_vm0, %v259_v19  ;;  %792 = vmatprep.mubr.msk.f32.mxu1 %vm269_vm0, %v257_v21  ;;  %p984_p8 = scmp.lt.s32.totalorder %s1245_s5, %s982_s18  ;;  %p985_p10 = scmp.lt.s32.totalorder %s983_s28, %s977_s25 }
  0x51   : > { %786 = vmatmul.mubr.msk.f32.vlgmr.msra.gmra.mxu0 %vm269_vm0, %v260_v22  ;;  %793 = vmatmul.mubr.msk.f32.vlgmr.msra.gmra.mxu1 %vm269_vm0, %v258_v25  ;;  %p980_p6 = pneg %p979_p4 }
  0x52   : > { %796 = vmatpush3.msra.mxu0 %v268_v0  ;;  %799 = vmatprep.mubr.msk.f32.mxu0 %vm269_vm0, %v263_v20  ;;  %p986_p11 = por %p985_p10, %p984_p8 }
  0x53   : > { %797 = vmatprep.subr.mxu0 %v267_v2  ;;  %803 = vmatpush3.msra.mxu1 %v266_v1 }
  0x54   : > { %798 = vmatpush3.msra.mxu0 %v267_v2  ;;  %804 = vmatprep.subr.mxu1 %v265_v3  ;;  %p987_p2 = pnand %p986_p11, %p980_p6 }
  0x55   : > { %806 = vmatprep.mubr.msk.f32.mxu1 %vm269_vm0, %v261_v24  ;;  %805 = vmatpush3.msra.mxu1 %v265_v3 }
  0x56   : > { %800 = vmatmul.mubr.msk.f32.vlgmr.msra.gmra.mxu0 %vm269_vm0, %v264_v26  ;;  %807 = vmatmul.mubr.msk.f32.vlgmr.msra.gmra.mxu1 %vm269_vm0, %v262_v27 }
 0x111   : > { %v787_v28 = vpop.f32.mrf.mxu0  ;;  %v794_v29 = vpop.f32.mrf.mxu1 }
 0x112   : > { %v429_v31 = vadd.f32 %v794_v29, %v787_v28 }
 0x113   : > { %v342_v30 = vpop.f32.mrf.mxu0  ;;  %v423_v32 = vpop.f32.mrf.mxu1 }
 0x114   : > { %v424_v33 = vadd.f32 %v423_v32, %v342_v30 }
 0x116   : > { %v801_v34 = vpop.f32.mrf.mxu0  ;;  %v808_v35 = vpop.f32.mrf.mxu1 }
 0x117   : > { %v591_v39 = vadd.f32 %v808_v35, %v801_v34 }
 0x118   : > { %v504_v36 = vpop.f32.mrf.mxu0  ;;  %v585_v37 = vpop.f32.mrf.mxu1 }
 0x119   : > { %v586_v38 = vadd.f32 %v585_v37, %v504_v36 }
 0x11b   : > { %596 = vrot.lane.b32.xlu0 %v586_v38, %s1068_s20 }
 0x11f   : > { %598 = vrot.lane.b32.xlu0 %v591_v39, %s1068_s20 }
 0x18d   : > { %v597_v40 = vpop.permute.xlu0 %596 }
 0x18e   : > { %v603_v41 = vsel %vm602_vm1, %v424_v33, %v597_v40 }
 0x18f   : > { %606 = vst.msk [vmem:[%s235_s24] sm:$0xff] %vm605_vm2, %v603_v41 }
 0x191   : > { %v599_v42 = vpop.permute.xlu0 %598 }
 0x192   : > { %v604_v43 = vsel %vm602_vm1, %v429_v31, %v599_v42 }
 0x193   : > { %607 = vst.msk [vmem:[%s235_s24 + $0x8] sm:$0xff] %vm605_vm2, %v604_v43 }
 0x194   : > { %990 = shalt.err (!%p987_p2)
}
 0x195   : > { %s991_s27 = scalar_lea.hbm %s1250_s21, 256  ;;  %s995_s6 = scalar_lea.hbm %s1301_s3, 512 }
 0x196   : > { %p992_p9 = scmp.ne.s32.totalorder %s1250_s21, %s991_s27  ;;  %p996_p0 = scmp.lt.s32.totalorder %s1250_s21, %s1301_s3 }
 0x197   : > { %p997_p7 = scmp.lt.s32.totalorder %s995_s6, %s991_s27 }
 0x198   : > { %p993_p12 = pnand %p992_p9, %p1193_p3 }
 0x199   : > { %p998_p5 = por %p997_p7, %p996_p0 }
 0x19a   : > { %p994_p13 = pneg %p993_p12 }
 0x19c   : > { %p999_p1 = pnand %p998_p5, %p994_p13 }
 0x19e   : > { %1002 = shalt.err (!%p999_p1)
}
 0x19f   : > { %s1070_s24 = smov 128   ;;  %s1071_s7 = smov 8  }
 0x1a0   : > { %819 = dma.vmem_to_hbm [thread:$0]  (%p1193_p3), %s1245_s5, 256, %s1250_s21, %s609_s10, %s1070_s24, %s1070_s24, %s1071_s7  }
 0x1a1 PF: > { %s639_s8 = sand.u32 1, %s1041_s12   ;;  %p1312_p4 = scmp.ne.s32.totalorder %s1306_s23, 0 }
 0x1a2   : > { %p1313_p6 = scmp.ge.s32.totalorder %s1061_s17, 2  ;;  %s640_s9 = scalar_lea.sflag [#allocation4], %s639_s8 }
 0x1a4   : > { %p833_p8 = pnand %p1313_p6, %p1312_p4 }
 0x1a6   : > { %p834_p10 = pneg %p833_p8 }
 0x1a8   : > { %1036 = dma.done.wait (%p834_p10), %s640_s9, 256  }
 0x1a9   : > { %1038 = vsyncadd (%p834_p10), %s640_s9, 4294967040  ;;  %s20_s17 = sadd.s32 1, %s1061_s17   ;;  %s1314_s12 = smov %s1045_s13 }
 0x1aa   : > { %p17_p11 = scmp.ge.s32.totalorder %s20_s17, 4   ;;  %s1315_s13 = smov %s1049_s14 }
 0x1ab   : > { %s1316_s14 = smov %s1202_s29  ;;  %s1317_s15 = smov %s1057_s16 }
 0x1ac   : > { %s1318_s16 = smov %s1320_s11  ;;  %19 = sbr.rel (!%p17_p11) target bundleno = 7 (0x7), region = 88 }
 0x1b1   :  { %645 = vsyncpa [#allocation3], 1 }
 0x1b2   :  { %647 = vsyncpa [#allocation3 + $0x1], 1 }
 0x1b3   :  { %648 = vsyncpa [#allocation6], 1 }
 0x1b4   :  { %649 = vsyncpa [#allocation4], 1 }
 0x1b5   :  { %651 = vsyncpa [#allocation4 + $0x1], 1 }

</bundles_post_ra>
